<compile_context>
chip_gen: v7x
topology: tpu7x:2x2x1
jax: 0.10.0
libtpu: 0.0.40
codegen_flags: <defaults>
</compile_context>

<pallas_src>
import functools
import math

import jax
import jax.numpy as jnp
import numpy as np
from jax import lax
from jax.experimental import pallas as pl
from jax.experimental.pallas import tpu as pltpu


# ----------------------------------------------------------------------------- helpers
def make_pe_table(d_model: int, max_len: int = 10000) -> jnp.ndarray:
    """Deterministic init-time construction of the fixed PE buffer (matches __init__)."""
    position = jnp.arange(max_len, dtype=jnp.float32)[:, None]                 # (max_len, 1)
    div_term = jnp.exp(
        jnp.arange(0, d_model, 2, dtype=jnp.float32) * -(math.log(10000.0) / d_model)
    )
    ang = position * div_term                                                  # (max_len, ceil(d/2))
    pe = jnp.zeros((max_len, d_model), dtype=jnp.float32)
    pe = pe.at[:, 0::2].set(jnp.sin(ang))
    # Odd d_model: original PyTorch module would raise; we truncate cos instead.
    pe = pe.at[:, 1::2].set(jnp.cos(ang)[:, : d_model // 2])
    return pe


def _round_up(a: int, b: int) -> int:
    return ((a + b - 1) // b) * b


def _vmem_capacity_bytes() -> int:
    """Physical VMEM per TensorCore; conservative (v7x) fallback if the query fails."""
    try:
        info = pltpu.get_tpu_info()
        cap = getattr(info, "vmem_capacity_bytes", None)
        if cap:
            return int(cap)
    except Exception:
        pass
    return 64 << 20


_HBM_GATHER_ROWS = 32        # rows gathered per grid step on the small-n (HBM) path
_MAX_IDX_PER_CALL = 65536    # keeps the scalar-prefetched idx (SMEM, pow2-padded) <= 256 KiB


# ----------------------------------------------------------------------------- kernels
def _resident_gather_kernel(idx_ref, pe_ref, out_ref, *, row_axis):
    """Gather rows of the VMEM-resident pe column slab into the output row chunk.

    idx_ref: SMEM (n_pad,) int32  -- scalar-prefetched flat indices (pre-clamped, padded)
    pe_ref : VMEM (max_len, dc)   -- resident column slab of the pe table
    out_ref: VMEM (R, dc)         -- output row chunk, R a multiple of 8
    """
    R = out_ref.shape[0]
    dc = out_ref.shape[1]
    chunk_base = pl.program_id(row_axis) * R

    def group_body(g, carry):
        base8 = g * 8
        # Gather 8 source rows (dynamic sublane loads -> XLU shuffles), pack them into
        # one (8, dc) block, and emit a single unmasked 8-aligned sublane store.
        rows = [pe_ref[pl.ds(idx_ref[chunk_base + base8 + k], 1), :] for k in range(8)]
        off = pl.multiple_of(base8, 8)
        out_ref[pl.ds(off, 8), :] = jnp.concatenate(rows, axis=0)
        return carry

    # Light unroll across groups when the per-group vreg footprint is small.
    unroll = 2 if dc <= 256 else 1
    lax.fori_loop(0, R // 8, group_body, 0, unroll=unroll)


def _hbm_gather_kernel(idx_ref, pe_hbm_ref, out_ref, buf_ref, sem_ref):
    """Small-n path: gather rows directly from the HBM-resident table with async DMAs.

    idx_ref   : SMEM (n_pad,) int32
    pe_hbm_ref: HBM/ANY (max_len, d_model)
    out_ref   : VMEM (RA, d_model) output block
    buf_ref   : VMEM (RA, d_model) DMA landing buffer
    sem_ref   : DMA semaphores (RA,)
    """
    RA = out_ref.shape[0]
    base = pl.program_id(0) * RA

    copies = []
    for r in range(RA):                       # static: RA descriptors issued back-to-back
        pos = idx_ref[base + r]
        cp = pltpu.make_async_copy(
            pe_hbm_ref.at[pl.ds(pos, 1), :], buf_ref.at[pl.ds(r, 1), :], sem_ref.at[r]
        )
        cp.start()
        copies.append(cp)
    for cp in copies:
        cp.wait()

    out_ref[...] = buf_ref[...]               # one full-block (unmasked) store


# ----------------------------------------------------------------------------- wrapper
def _lookup_flat(idx, pe, rows_per_step, use_hbm_gather):
    n = int(idx.shape[0])
    max_len, d_model = (int(s) for s in pe.shape)
    itemsize = int(jnp.dtype(pe.dtype).itemsize)

    # Per-generation VMEM budget (v7x: ~48 MiB of its 64 MiB/TC; v5e/v6e: up to 100 MiB).
    vmem_cap = _vmem_capacity_bytes()
    vmem_limit = int(min(max(vmem_cap - (16 << 20), 32 << 20), 100 << 20))

    # Column (lane) tile of the resident slab.  The pipeline double-buffers it, so the
    # slab may use at most ~half of what is left after the output blocks + headroom.
    out_buf_bytes = 2 * rows_per_step * d_model * itemsize
    col_budget = max((vmem_limit - out_buf_bytes - (6 << 20)) // 2, 2 << 20)

    if d_model % 128 == 0:
        cands = [c for c in range(128, d_model + 1, 128) if d_model % c == 0]
        fitting = [c for c in cands if max_len * c * itemsize <= col_budget]
        dc = max(fitting) if fitting else min(cands)
    else:
        dc = d_model
    num_col = d_model // dc
    slab_fits = max_len * dc * itemsize <= col_budget

    if use_hbm_gather is None:
        # Small-n regime (reading the whole table would dominate) or table too big.
        use_hbm_gather = (n * 16 <= max_len) or (not slab_fits)

    # ---------------------------------------------------------------- HBM gather path
    if use_hbm_gather:
        RA = _HBM_GATHER_ROWS
        num_chunks = -(-n // RA)
        n_pad = num_chunks * RA
        out_rows = max(n, RA)
        idx_pad = jnp.pad(idx, (0, n_pad - n)) if n_pad != n else idx

        out = pl.pallas_call(
            _hbm_gather_kernel,
            out_shape=jax.ShapeDtypeStruct((out_rows, d_model), pe.dtype),
            grid_spec=pltpu.PrefetchScalarGridSpec(
                num_scalar_prefetch=1,
                grid=(num_chunks,),
                in_specs=[pl.BlockSpec(memory_space=pl.ANY)],      # pe stays in HBM
                out_specs=pl.BlockSpec((RA, d_model), lambda i, idx_ref: (i, 0)),
                scratch_shapes=[
                    pltpu.VMEM((RA, d_model), pe.dtype),
                    pltpu.SemaphoreType.DMA((RA,)),
                ],
            ),
            compiler_params=pltpu.CompilerParams(
                dimension_semantics=("parallel",),
                vmem_limit_bytes=32 << 20,
            ),
        )(idx_pad, pe)
        return out[:n] if out_rows > n else out

    # ------------------------------------------------------------ resident-slab path
    if n >= rows_per_step:
        R = rows_per_step
    elif n >= 8:
        R = (n // 8) * 8                     # R <= n, still a multiple of 8
    else:
        R = 8
    num_chunks = -(-n // R)
    n_pad = num_chunks * R
    out_rows = max(n, R)                     # > n only when n < 8 (trivial slice after)
    idx_pad = jnp.pad(idx, (0, n_pad - n)) if n_pad != n else idx

    if num_col == 1:
        # 1-D grid over row chunks: the parallel (megacore-sharded) axis IS the row axis.
        grid = (num_chunks,)
        in_specs = [pl.BlockSpec((max_len, d_model), lambda i, idx_ref: (0, 0))]
        out_specs = pl.BlockSpec((R, d_model), lambda i, idx_ref: (i, 0))
        dims = ("parallel",)
        row_axis = 0
    else:
        # Column tiles outer so the pe slab stays resident along the inner row axis.
        grid = (num_col, num_chunks)
        in_specs = [pl.BlockSpec((max_len, dc), lambda j, i, idx_ref: (0, j))]
        out_specs = pl.BlockSpec((R, dc), lambda j, i, idx_ref: (i, j))
        dims = ("parallel", "parallel")
        row_axis = 1

    out = pl.pallas_call(
        functools.partial(_resident_gather_kernel, row_axis=row_axis),
        out_shape=jax.ShapeDtypeStruct((out_rows, d_model), pe.dtype),
        grid_spec=pltpu.PrefetchScalarGridSpec(
            num_scalar_prefetch=1,           # idx_pad lands in SMEM
            grid=grid,
            in_specs=in_specs,
            out_specs=out_specs,
        ),
        compiler_params=pltpu.CompilerParams(
            dimension_semantics=dims,
            vmem_limit_bytes=vmem_limit,
        ),
    )(idx_pad, pe)
    return out[:n] if out_rows > n else out


def int_encoding_forward(x, pe, *, rows_per_step: int = 512, use_hbm_gather=None):
    """Pallas implementation of IntEncoding.forward: returns pe[x, :].

    Note: indices are clamped to [0, max_len-1]; PyTorch raises on OOB indices and wraps
    negative ones Python-style.
    """
    orig_shape = tuple(int(s) for s in x.shape)
    max_len, d_model = (int(s) for s in pe.shape)
    n = int(np.prod(orig_shape)) if orig_shape else 1
    if n == 0:
        return jnp.zeros(orig_shape + (d_model,), pe.dtype)

    idx = jnp.clip(jnp.reshape(x, (n,)).astype(jnp.int32), 0, max_len - 1)
    rows_per_step = max(8, _round_up(int(rows_per_step), 8))

    if n > _MAX_IDX_PER_CALL:
        # Segment very large index arrays so the SMEM-resident idx stays bounded.
        parts = [
            _lookup_flat(idx[s:min(s + _MAX_IDX_PER_CALL, n)], pe, rows_per_step, use_hbm_gather)
            for s in range(0, n, _MAX_IDX_PER_CALL)
        ]
        flat = jnp.concatenate(parts, axis=0)
    else:
        flat = _lookup_flat(idx, pe, rows_per_step, use_hbm_gather)

    return flat.reshape(orig_shape + (d_model,))


# ----------------------------------------------------------------------------- demo
if __name__ == "__main__":
    d_model = 32
    max_len = 64
    B, S = 2, 8

    pe = make_pe_table(d_model, max_len)
    key = jax.random.PRNGKey(0)
    x = jax.random.randint(key, (B, S), minval=0, maxval=max_len, dtype=jnp.int32)

    # 1) Resident-table (VMEM slab) gather path.
    out = jax.block_until_ready(int_encoding_forward(x, pe))
    ref = pe[x, :]
    assert out.shape == (B, S, d_model)
    assert out.dtype == jnp.float32
    assert jnp.array_equal(out, ref)

    # 2) Multi-chunk + ragged-final-block path (n not a multiple of the row chunk).
    x2 = jax.random.randint(jax.random.PRNGKey(1), (3, 50), minval=0, maxval=max_len,
                            dtype=jnp.int32)
    out2 = jax.block_until_ready(int_encoding_forward(x2, pe, rows_per_step=64))
    assert jnp.array_equal(out2, pe[x2, :])

    # 3) Small-n fast path: rows gathered straight from HBM via async DMAs.
    x3 = jax.random.randint(jax.random.PRNGKey(2), (2, 9), minval=0, maxval=max_len,
                            dtype=jnp.int32)
    out3 = jax.block_until_ready(int_encoding_forward(x3, pe, use_hbm_gather=True))
    assert jnp.array_equal(out3, pe[x3, :])

    print("KERNEL_OK")
</pallas_src>

<mosaic_0001>
module attributes {stable_mosaic.version = 11 : i64} {
  func.func @_resident_gather_kernel(%arg0: i32, %arg1: memref<16xi32, #tpu.memory_space<smem>>, %arg2: memref<64x32xf32, #tpu.memory_space<vmem>>, %arg3: memref<16x32xf32, #tpu.memory_space<vmem>>) attributes {dimension_semantics = [#tpu.dimension_semantics<parallel>], iteration_bounds = array<i64: 1>, scalar_prefetch = 1 : i64, scratch_operands = 0 : i64, tpu.core_type = #tpu.core_type<tc>, window_params = [{pipeline_mode = #tpu.pipeline_mode<synchronous>, transform_indices = @transform_0, window_bounds = array<i64: 64, 32>}, {transform_indices = @transform_1, window_bounds = array<i64: 16, 32>}]} {
    %c16_i32 = arith.constant 16 : i32
    %0 = arith.muli %arg0, %c16_i32 : i32
    %c0_i32 = arith.constant 0 : i32
    %c8_i32 = arith.constant 8 : i32
    %1 = arith.muli %c0_i32, %c8_i32 : i32
    %2 = arith.addi %0, %1 : i32
    %c0_i32_0 = arith.constant 0 : i32
    %3 = arith.addi %2, %c0_i32_0 : i32
    %4 = arith.index_cast %3 : i32 to index
    %5 = memref.load %arg1[%4] : memref<16xi32, #tpu.memory_space<smem>>
    %6 = arith.index_cast %5 : i32 to index
    %c0 = arith.constant 0 : index
    %7 = vector.load %arg2[%6, %c0] : memref<64x32xf32, #tpu.memory_space<vmem>>, vector<1x32xf32>
    %8 = arith.addi %0, %1 : i32
    %c1_i32 = arith.constant 1 : i32
    %9 = arith.addi %8, %c1_i32 : i32
    %10 = arith.index_cast %9 : i32 to index
    %11 = memref.load %arg1[%10] : memref<16xi32, #tpu.memory_space<smem>>
    %12 = arith.index_cast %11 : i32 to index
    %c0_1 = arith.constant 0 : index
    %13 = vector.load %arg2[%12, %c0_1] : memref<64x32xf32, #tpu.memory_space<vmem>>, vector<1x32xf32>
    %14 = arith.addi %0, %1 : i32
    %c2_i32 = arith.constant 2 : i32
    %15 = arith.addi %14, %c2_i32 : i32
    %16 = arith.index_cast %15 : i32 to index
    %17 = memref.load %arg1[%16] : memref<16xi32, #tpu.memory_space<smem>>
    %18 = arith.index_cast %17 : i32 to index
    %c0_2 = arith.constant 0 : index
    %19 = vector.load %arg2[%18, %c0_2] : memref<64x32xf32, #tpu.memory_space<vmem>>, vector<1x32xf32>
    %20 = arith.addi %0, %1 : i32
    %c3_i32 = arith.constant 3 : i32
    %21 = arith.addi %20, %c3_i32 : i32
    %22 = arith.index_cast %21 : i32 to index
    %23 = memref.load %arg1[%22] : memref<16xi32, #tpu.memory_space<smem>>
    %24 = arith.index_cast %23 : i32 to index
    %c0_3 = arith.constant 0 : index
    %25 = vector.load %arg2[%24, %c0_3] : memref<64x32xf32, #tpu.memory_space<vmem>>, vector<1x32xf32>
    %26 = arith.addi %0, %1 : i32
    %c4_i32 = arith.constant 4 : i32
    %27 = arith.addi %26, %c4_i32 : i32
    %28 = arith.index_cast %27 : i32 to index
    %29 = memref.load %arg1[%28] : memref<16xi32, #tpu.memory_space<smem>>
    %30 = arith.index_cast %29 : i32 to index
    %c0_4 = arith.constant 0 : index
    %31 = vector.load %arg2[%30, %c0_4] : memref<64x32xf32, #tpu.memory_space<vmem>>, vector<1x32xf32>
    %32 = arith.addi %0, %1 : i32
    %c5_i32 = arith.constant 5 : i32
    %33 = arith.addi %32, %c5_i32 : i32
    %34 = arith.index_cast %33 : i32 to index
    %35 = memref.load %arg1[%34] : memref<16xi32, #tpu.memory_space<smem>>
    %36 = arith.index_cast %35 : i32 to index
    %c0_5 = arith.constant 0 : index
    %37 = vector.load %arg2[%36, %c0_5] : memref<64x32xf32, #tpu.memory_space<vmem>>, vector<1x32xf32>
    %38 = arith.addi %0, %1 : i32
    %c6_i32 = arith.constant 6 : i32
    %39 = arith.addi %38, %c6_i32 : i32
    %40 = arith.index_cast %39 : i32 to index
    %41 = memref.load %arg1[%40] : memref<16xi32, #tpu.memory_space<smem>>
    %42 = arith.index_cast %41 : i32 to index
    %c0_6 = arith.constant 0 : index
    %43 = vector.load %arg2[%42, %c0_6] : memref<64x32xf32, #tpu.memory_space<vmem>>, vector<1x32xf32>
    %44 = arith.addi %0, %1 : i32
    %c7_i32 = arith.constant 7 : i32
    %45 = arith.addi %44, %c7_i32 : i32
    %46 = arith.index_cast %45 : i32 to index
    %47 = memref.load %arg1[%46] : memref<16xi32, #tpu.memory_space<smem>>
    %48 = arith.index_cast %47 : i32 to index
    %c0_7 = arith.constant 0 : index
    %49 = vector.load %arg2[%48, %c0_7] : memref<64x32xf32, #tpu.memory_space<vmem>>, vector<1x32xf32>
    %50 = tpu.assume_multiple %1, 8 : i32
    %51 = tpu.concatenate %7, %13, %19, %25, %31, %37, %43, %49 in 0 : vector<1x32xf32>, vector<1x32xf32>, vector<1x32xf32>, vector<1x32xf32>, vector<1x32xf32>, vector<1x32xf32>, vector<1x32xf32>, vector<1x32xf32> -> vector<8x32xf32>
    %52 = arith.index_cast %50 : i32 to index
    %c0_8 = arith.constant 0 : index
    %53 = vector.load %arg3[%52, %c0_8] : memref<16x32xf32, #tpu.memory_space<vmem>>, vector<8x32xf32>
    tpu.vector_store %arg3[%52, %c0_8], %51 {strides = array<i32>} : memref<16x32xf32, #tpu.memory_space<vmem>>, vector<8x32xf32>,
    %c1_i32_9 = arith.constant 1 : i32
    %c8_i32_10 = arith.constant 8 : i32
    %54 = arith.muli %c1_i32_9, %c8_i32_10 : i32
    %55 = arith.addi %0, %54 : i32
    %c0_i32_11 = arith.constant 0 : i32
    %56 = arith.addi %55, %c0_i32_11 : i32
    %57 = arith.index_cast %56 : i32 to index
    %58 = memref.load %arg1[%57] : memref<16xi32, #tpu.memory_space<smem>>
    %59 = arith.index_cast %58 : i32 to index
    %c0_12 = arith.constant 0 : index
    %60 = vector.load %arg2[%59, %c0_12] : memref<64x32xf32, #tpu.memory_space<vmem>>, vector<1x32xf32>
    %61 = arith.addi %0, %54 : i32
    %c1_i32_13 = arith.constant 1 : i32
    %62 = arith.addi %61, %c1_i32_13 : i32
    %63 = arith.index_cast %62 : i32 to index
    %64 = memref.load %arg1[%63] : memref<16xi32, #tpu.memory_space<smem>>
    %65 = arith.index_cast %64 : i32 to index
    %c0_14 = arith.constant 0 : index
    %66 = vector.load %arg2[%65, %c0_14] : memref<64x32xf32, #tpu.memory_space<vmem>>, vector<1x32xf32>
    %67 = arith.addi %0, %54 : i32
    %c2_i32_15 = arith.constant 2 : i32
    %68 = arith.addi %67, %c2_i32_15 : i32
    %69 = arith.index_cast %68 : i32 to index
    %70 = memref.load %arg1[%69] : memref<16xi32, #tpu.memory_space<smem>>
    %71 = arith.index_cast %70 : i32 to index
    %c0_16 = arith.constant 0 : index
    %72 = vector.load %arg2[%71, %c0_16] : memref<64x32xf32, #tpu.memory_space<vmem>>, vector<1x32xf32>
    %73 = arith.addi %0, %54 : i32
    %c3_i32_17 = arith.constant 3 : i32
    %74 = arith.addi %73, %c3_i32_17 : i32
    %75 = arith.index_cast %74 : i32 to index
    %76 = memref.load %arg1[%75] : memref<16xi32, #tpu.memory_space<smem>>
    %77 = arith.index_cast %76 : i32 to index
    %c0_18 = arith.constant 0 : index
    %78 = vector.load %arg2[%77, %c0_18] : memref<64x32xf32, #tpu.memory_space<vmem>>, vector<1x32xf32>
    %79 = arith.addi %0, %54 : i32
    %c4_i32_19 = arith.constant 4 : i32
    %80 = arith.addi %79, %c4_i32_19 : i32
    %81 = arith.index_cast %80 : i32 to index
    %82 = memref.load %arg1[%81] : memref<16xi32, #tpu.memory_space<smem>>
    %83 = arith.index_cast %82 : i32 to index
    %c0_20 = arith.constant 0 : index
    %84 = vector.load %arg2[%83, %c0_20] : memref<64x32xf32, #tpu.memory_space<vmem>>, vector<1x32xf32>
    %85 = arith.addi %0, %54 : i32
    %c5_i32_21 = arith.constant 5 : i32
    %86 = arith.addi %85, %c5_i32_21 : i32
    %87 = arith.index_cast %86 : i32 to index
    %88 = memref.load %arg1[%87] : memref<16xi32, #tpu.memory_space<smem>>
    %89 = arith.index_cast %88 : i32 to index
    %c0_22 = arith.constant 0 : index
    %90 = vector.load %arg2[%89, %c0_22] : memref<64x32xf32, #tpu.memory_space<vmem>>, vector<1x32xf32>
    %91 = arith.addi %0, %54 : i32
    %c6_i32_23 = arith.constant 6 : i32
    %92 = arith.addi %91, %c6_i32_23 : i32
    %93 = arith.index_cast %92 : i32 to index
    %94 = memref.load %arg1[%93] : memref<16xi32, #tpu.memory_space<smem>>
    %95 = arith.index_cast %94 : i32 to index
    %c0_24 = arith.constant 0 : index
    %96 = vector.load %arg2[%95, %c0_24] : memref<64x32xf32, #tpu.memory_space<vmem>>, vector<1x32xf32>
    %97 = arith.addi %0, %54 : i32
    %c7_i32_25 = arith.constant 7 : i32
    %98 = arith.addi %97, %c7_i32_25 : i32
    %99 = arith.index_cast %98 : i32 to index
    %100 = memref.load %arg1[%99] : memref<16xi32, #tpu.memory_space<smem>>
    %101 = arith.index_cast %100 : i32 to index
    %c0_26 = arith.constant 0 : index
    %102 = vector.load %arg2[%101, %c0_26] : memref<64x32xf32, #tpu.memory_space<vmem>>, vector<1x32xf32>
    %103 = tpu.assume_multiple %54, 8 : i32
    %104 = tpu.concatenate %60, %66, %72, %78, %84, %90, %96, %102 in 0 : vector<1x32xf32>, vector<1x32xf32>, vector<1x32xf32>, vector<1x32xf32>, vector<1x32xf32>, vector<1x32xf32>, vector<1x32xf32>, vector<1x32xf32> -> vector<8x32xf32>
    %105 = arith.index_cast %103 : i32 to index
    %c0_27 = arith.constant 0 : index
    %106 = vector.load %arg3[%105, %c0_27] : memref<16x32xf32, #tpu.memory_space<vmem>>, vector<8x32xf32>
    tpu.vector_store %arg3[%105, %c0_27], %104 {strides = array<i32>} : memref<16x32xf32, #tpu.memory_space<vmem>>, vector<8x32xf32>,
    %c2_i32_28 = arith.constant 2 : i32
    return
  }
  func.func @transform_0(%arg0: i32, %arg1: memref<16xi32, #tpu.memory_space<smem>>) -> (i32, i32) {
    %c0_i32 = arith.constant 0 : i32
    %c0_i32_0 = arith.constant 0 : i32
    %c0_i32_1 = arith.constant 0 : i32
    return %c0_i32, %c0_i32_0 : i32, i32
  }
  func.func @transform_1(%arg0: i32, %arg1: memref<16xi32, #tpu.memory_space<smem>>) -> (i32, i32) {
    %c0_i32 = arith.constant 0 : i32
    %c0_i32_0 = arith.constant 0 : i32
    return %arg0, %c0_i32 : i32, i32
  }
}

</mosaic_0001>

<bundles_post_ra>
// kernel: tpu_custom_call.1
= control target key start
LH: loop header
LB: loop body
LE: loop exit
PB: predicated region body
PF: predicated region fallthrough
CT: control target
= control target key end

     0   :  { %s352_s0 = inlined_call_operand.vmem [shape: s32[16], index: 0, kind: input, shape index: {}]   ;;  %s353_s1 = inlined_call_operand.vmem [shape: f32[64,32], index: 1, kind: input, shape index: {}]   ;;  %s354_s2 = inlined_call_operand.hbm [shape: f32[16,32], index: 2, kind: output, shape index: {}]  }
   0x1   :  { %s7_s11 = sshll.u32 %s352_s0, 4  ;;  %s8_s11 = int_to_ptr.vmem [resolvable:$true] %s7_s11 }
   0x2   :  { %s198_s12 = scalar_lea.vmem %s8_s11, 16  ;;  %p203_p1 = scmp.lt.s32.totalorder %s8_s11, %s8_s11 }
   0x3   :  { %p199_p0 = scmp.ne.s32.totalorder %s8_s11, %s198_s12  ;;  %p204_p2 = scmp.lt.s32.totalorder %s198_s12, %s198_s12 }
   0x5   :  { %p205_p3 = por %p204_p2, %p203_p1 }
   0x7   :  { %p206_p4 = pnand %p205_p3, %p199_p0 }
   0x9   :  { %209 = shalt.err (!%p206_p4)  }
   0xa   :  { %s236_s13 = smov [#allocation3]  }
   0xb   :  { %10 = dma.vmem_to_smem %s8_s11, 16, %s236_s13, [#allocation2] }
   0xc   :  { %232 = dma.done.wait [#allocation2], 16 }
   0xd   :  { %233 = vsyncadd [#allocation2], 4294967280 }
   0xe   :  { %12 = sfence }
   0xf   :  { %s17_s14 = sld [smem:[#allocation3]]  ;;  %s179_s15 = sld [smem:[#allocation3 + $0x1]] }
  0x10   :  { %s180_s16 = sld [smem:[#allocation3 + $0x2]]  ;;  %s181_s17 = sld [smem:[#allocation3 + $0x3]] }
  0x11   :  { %s182_s18 = sld [smem:[#allocation3 + $0x4]]  ;;  %s183_s19 = sld [smem:[#allocation3 + $0x5]] }
  0x12   :  { %s258_s0 = sld [smem:[#allocation3 + $0x6]]  ;;  %s260_s20 = sld [smem:[#allocation3 + $0x7]] }
  0x13   :  { %s262_s21 = sld [smem:[#allocation3 + $0x8]]  ;;  %s264_s22 = sld [smem:[#allocation3 + $0x9]] }
  0x14   :  { %13 = vsyncpa [#allocation5], 0  ;;  %s266_s23 = sld [smem:[#allocation3 + $0xa]]  ;;  %s268_s24 = sld [smem:[#allocation3 + $0xb]]  ;;  %vm69_vm0 = vcmask 1040384   ;;  %vm71_vm1 = vcmask 1041408  }
  0x15   :  { %s18_s27 = scalar_lea.vmem %s353_s1, %s17_s14  ;;  %s22_s30 = scalar_lea.vmem %s353_s1, %s179_s15  ;;  %vm73_vm2 = vcmask 1042432   ;;  %vm75_vm3 = vcmask 1043456   ;;  %vm77_vm4 = vcmask 1044480   ;;  %vm79_vm5 = vcmask 1045504  }
  0x16   :  { %v19_v0 = vld [vmem:[%s18_s27] sm:$0x1]  ;;  %s26_s5 = scalar_lea.vmem %s353_s1, %s180_s16  ;;  %s30_s8 = scalar_lea.vmem %s353_s1, %s181_s17  ;;  %vm81_vm6 = vcmask 1046528   ;;  %vm83_vm7 = vcmask 261120  }
  0x17   :  { %v23_v1 = vld [vmem:[%s22_s30] sm:$0x1]  ;;  %s34_s11 = scalar_lea.vmem %s353_s1, %s182_s18  ;;  %s38_s14 = scalar_lea.vmem %s353_s1, %s183_s19 }
  0x18   :  { %v27_v2 = vld [vmem:[%s26_s5] sm:$0x1]  ;;  %v49_v4 = vrot.slane %v23_v1, 7  ;;  %s42_s17 = scalar_lea.vmem %s353_s1, %s258_s0  ;;  %s46_s27 = scalar_lea.vmem %s353_s1, %s260_s20 }
  0x19   :  { %v31_v3 = vld [vmem:[%s30_s8] sm:$0x1]  ;;  %v52_v7 = vrot.slane %v27_v2, 6  ;;  %s87_s28 = scalar_lea.vmem %s353_s1, %s262_s21  ;;  %s91_s30 = scalar_lea.vmem %s353_s1, %s264_s22 }
  0x1a   :  { %v35_v5 = vld [vmem:[%s34_s11] sm:$0x1]  ;;  %v55_v8 = vrot.slane %v31_v3, 5  ;;  %v70_v13 = vsel %vm69_vm0, %v19_v0, %v49_v4  ;;  %s95_s4 = scalar_lea.vmem %s353_s1, %s266_s23  ;;  %s99_s7 = scalar_lea.vmem %s353_s1, %s268_s24 }
  0x1b   :  { %v39_v6 = vld [vmem:[%s38_s14] sm:$0x1]  ;;  %v58_v11 = vrot.slane %v35_v5, 4  ;;  %v72_v16 = vsel %vm71_vm1, %v70_v13, %v52_v7  ;;  %s190_s21 = sld [smem:[#allocation3 + $0xc]]  ;;  %s191_s22 = sld [smem:[#allocation3 + $0xd]] }
  0x1c   :  { %v43_v9 = vld [vmem:[%s42_s17] sm:$0x1]  ;;  %v61_v12 = vrot.slane %v39_v6, 3  ;;  %v74_v19 = vsel %vm73_vm2, %v72_v16, %v55_v8  ;;  %s192_s8 = sld [smem:[#allocation3 + $0xe]]  ;;  %s193_s9 = sld [smem:[#allocation3 + $0xf]] }
  0x1d   :  { %v47_v10 = vld [vmem:[%s46_s27] sm:$0x1]  ;;  %v64_v14 = vrot.slane %v43_v9, 2  ;;  %v76_v22 = vsel %vm75_vm3, %v74_v19, %v58_v11  ;;  %s237_s27 = smov [#allocation4]  }
  0x1e   :  { %v67_v15 = vrot.slane %v47_v10, 1  ;;  %v88_v17 = vld [vmem:[%s87_s28] sm:$0x1]  ;;  %v78_v25 = vsel %vm77_vm4, %v76_v22, %v61_v12  ;;  %s152_s18 = sshll.u32 %s237_s27, 4  ;;  %s153_s18 = int_to_ptr.vmem [resolvable:$true] %s152_s18 }
  0x1f   :  { %v92_v18 = vld [vmem:[%s91_s30] sm:$0x1]  ;;  %v80_v26 = vsel %vm79_vm5, %v78_v25, %v64_v14  ;;  %s210_s19 = scalar_lea.vmem %s153_s18, 256  ;;  %p215_p6 = scmp.lt.s32.totalorder %s153_s18, %s153_s18 }
  0x20   :  { %v96_v20 = vld [vmem:[%s95_s4] sm:$0x1]  ;;  %v118_v23 = vrot.slane %v92_v18, 7  ;;  %v82_v29 = vsel %vm81_vm6, %v80_v26, %v67_v15  ;;  %p211_p5 = scmp.ne.s32.totalorder %s153_s18, %s210_s19  ;;  %p216_p7 = scmp.lt.s32.totalorder %s210_s19, %s210_s19 }
  0x21   :  { %v100_v21 = vld [vmem:[%s99_s7] sm:$0x1]  ;;  %v121_v24 = vrot.slane %v96_v20, 6  ;;  %84 = vst.msk [vmem:[#allocation4] sm:$0xff] %vm83_vm7, %v82_v29  ;;  %s103_s10 = scalar_lea.vmem %s353_s1, %s190_s21  ;;  %s107_s13 = scalar_lea.vmem %s353_s1, %s191_s22 }
  0x22   :  { %v124_v27 = vrot.slane %v100_v21, 5  ;;  %v138_v28 = vsel %vm69_vm0, %v88_v17, %v118_v23  ;;  %v104_v31 = vld [vmem:[%s103_s10] sm:$0x1]  ;;  %s111_s16 = scalar_lea.vmem %s353_s1, %s192_s8  ;;  %s115_s26 = scalar_lea.vmem %s353_s1, %s193_s9 }
  0x23   :  { %v139_v30 = vsel %vm71_vm1, %v138_v28, %v121_v24  ;;  %v108_v33 = vld [vmem:[%s107_s13] sm:$0x1]  ;;  %v127_v35 = vrot.slane %v104_v31, 4  ;;  %p217_p8 = por %p216_p7, %p215_p6 }
  0x24   :  { %v140_v32 = vsel %vm73_vm2, %v139_v30, %v124_v27  ;;  %v112_v34 = vld [vmem:[%s111_s16] sm:$0x1]  ;;  %v130_v37 = vrot.slane %v108_v33, 3 }
  0x25   :  { %v116_v36 = vld [vmem:[%s115_s26] sm:$0x1]  ;;  %v133_v38 = vrot.slane %v112_v34, 2  ;;  %v141_v40 = vsel %vm75_vm3, %v140_v32, %v127_v35  ;;  %p218_p9 = pnand %p217_p8, %p211_p5 }
  0x26   :  { %v136_v39 = vrot.slane %v116_v36, 1  ;;  %v142_v41 = vsel %vm77_vm4, %v141_v40, %v130_v37 }
  0x27   :  { %v143_v42 = vsel %vm79_vm5, %v142_v41, %v133_v38 }
  0x28   :  { %v144_v43 = vsel %vm81_vm6, %v143_v42, %v136_v39 }
  0x29   :  { %146 = vst.msk [vmem:[#allocation4 + $0x8] sm:$0xff] %vm83_vm7, %v144_v43 }
  0x2a   :  { %221 = shalt.err (!%p218_p9)
}
  0x2b   :  { %s222_s29 = scalar_lea.hbm %s354_s2, 256 }
  0x2c   :  { %p223_p10 = scmp.ne.s32.totalorder %s354_s2, %s222_s29  ;;  %p226_p11 = scmp.lt.u32.totalorder %s222_s29, %s354_s2 }
  0x2e   :  { %p228_p12 = pnand %p226_p11, %p223_p10 }
  0x30   :  { %231 = shalt.err (!%p228_p12)
}
  0x31   :  { %s238_s4 = smov 128   ;;  %s239_s5 = smov 8  }
  0x32   :  { %158 = dma.vmem_to_hbm [thread:$0]  %s153_s18, 256, %s354_s2, [#allocation5], %s238_s4, %s238_s4, %s239_s5  }
  0x33   :  { %234 = dma.done.wait [#allocation5], 256  }
  0x34   :  { %235 = vsyncadd [#allocation5], 4294967040 }
  0x35   :  { %162 = vsyncpa [#allocation5], 1 }

</bundles_post_ra>
